<compile_context>
chip_gen: v7x
topology: tpu7x:2x2x1
jax: 0.10.0
libtpu: 0.0.40
codegen_flags: <defaults>
</compile_context>

<pallas_src>
import functools

import jax
import jax.numpy as jnp
from jax import lax
from jax.experimental import pallas as pl
from jax.experimental.pallas import tpu as pltpu


def _cam_kernel(gamma_ref, x_ref, out_ref, *, nt, tk):
    # x_ref block: (BB, C, Np) in the input dtype.
    bb, c, _ = x_ref.shape

    x = x_ref[...]                                              # (BB, C, Np)

    # energy = x @ x^T, contracting the spatial axis, accumulated in f32.
    # K-tiled over N with static slices so each RHS transpose stays small.
    if nt == 1:
        energy = lax.dot_general(
            x, x,
            dimension_numbers=(((2,), (2,)), ((0,), (0,))),
            preferred_element_type=jnp.float32)                 # (BB, C, C)
    else:
        energy = jnp.zeros((bb, c, c), jnp.float32)
        for ti in range(nt):
            xt = x_ref[:, :, ti * tk:(ti + 1) * tk]             # (BB, C, tk)
            energy = energy + lax.dot_general(
                xt, xt,
                dimension_numbers=(((2,), (2,)), ((0,), (0,))),
                preferred_element_type=jnp.float32)

    # softmax(rowmax(E) - E) == softmax(-E); stabilize with rowmin(E).
    e_min = jnp.min(energy, axis=-1, keepdims=True)             # (BB, C, 1)
    p = jnp.exp(e_min - energy)                                 # (BB, C, C)
    attn = p * pl.reciprocal(jnp.sum(p, axis=-1, keepdims=True), approx=True)

    # out = attention @ x ; MXU operands in the input dtype, f32 accumulate.
    out = lax.dot_general(
        attn.astype(x_ref.dtype), x,
        dimension_numbers=(((2,), (1,)), ((0,), (0,))),
        preferred_element_type=jnp.float32)                     # (BB, C, Np)

    out_ref[...] = (gamma_ref[0] * out + x.astype(jnp.float32)
                    ).astype(out_ref.dtype)


def cam_module(x, gamma, *, tk_target=512, vmem_budget_bytes=24 << 20):
    """Channel attention: gamma * (softmax(-x@x^T) @ x) + x.

    x: (B, C, N) or (B, C, H, W); gamma: (1,) float32.
    """
    orig_shape = x.shape
    if x.ndim == 4:
        b4, c4, h4, w4 = x.shape
        x = x.reshape(b4, c4, h4 * w4)
    B, C, N = x.shape

    # Pad N to a lane-dense multiple of 128. Zero padding is exact for this
    # op: zero columns contribute nothing to energy and yield zero out cols.
    Np = ((N + 127) // 128) * 128
    x_in = x if Np == N else jnp.pad(x, ((0, 0), (0, 0), (0, Np - N)))

    in_item = jnp.dtype(x.dtype).itemsize

    # Batches per grid step: pack as many as fit the VMEM budget
    # (double-buffered in + out blocks plus the f32 temporaries).
    per_batch = C * Np * (4 * in_item + 8) + 3 * C * C * 4
    max_bb = max(1, vmem_budget_bytes // max(per_batch, 1))
    BB = 1
    for cand in range(min(B, max_bb), 0, -1):
        if B % cand == 0:
            BB = cand
            break

    # K tile of the x @ x^T contraction over N.
    tk = tk_target if (Np % tk_target == 0 and Np > tk_target) else Np
    nt = Np // tk

    needed = BB * per_batch + (1 << 20)
    vmem_limit = int(min(max(2 * needed, 32 << 20), 64 << 20))  # v7x cap

    kernel = functools.partial(_cam_kernel, nt=nt, tk=tk)

    cost = pl.CostEstimate(
        flops=4 * B * C * C * Np + 3 * B * C * Np,   # two matmuls + residual
        transcendentals=B * C * C + B * C,           # exp + reciprocal
        bytes_accessed=2 * B * C * Np * in_item + 4)

    out = pl.pallas_call(
        kernel,
        out_shape=jax.ShapeDtypeStruct((B, C, Np), x.dtype),
        grid=(B // BB,),
        in_specs=[
            pl.BlockSpec(memory_space=pltpu.MemorySpace.SMEM),  # gamma scalar
            pl.BlockSpec((BB, C, Np), lambda i: (i, 0, 0)),     # x batch block
        ],
        out_specs=pl.BlockSpec((BB, C, Np), lambda i: (i, 0, 0)),
        compiler_params=pltpu.CompilerParams(
            dimension_semantics=("parallel",),
            vmem_limit_bytes=vmem_limit),
        cost_estimate=cost,
    )(gamma, x_in)

    if Np != N:
        out = out[:, :, :N]
    return out.reshape(orig_shape)


def cam_reference(x, gamma):
    orig_shape = x.shape
    if x.ndim == 4:
        b4, c4, h4, w4 = x.shape
        x = x.reshape(b4, c4, h4 * w4)
    xf = x.astype(jnp.float32)
    energy = jnp.einsum("bcn,bdn->bcd", xf, xf)
    energy_new = jnp.max(energy, axis=-1, keepdims=True) - energy
    attn = jax.nn.softmax(energy_new, axis=-1)
    out = jnp.einsum("bcd,bdn->bcn", attn, xf)
    return (gamma[0] * out + xf).astype(x.dtype).reshape(orig_shape)


if __name__ == "__main__":
    key = jax.random.PRNGKey(0)
    B, C, H, W = 2, 4, 16, 16
    x = jax.random.normal(key, (B, C, H, W), dtype=jnp.float32)

    # Parameter init per module __init__: gamma = zeros(1) -> exact identity.
    gamma0 = jnp.zeros((1,), dtype=jnp.float32)
    out0 = jax.block_until_ready(cam_module(x, gamma0))
    ref0 = cam_reference(x, gamma0)
    assert out0.shape == x.shape
    assert jnp.allclose(out0, ref0, atol=1e-5, rtol=1e-5)

    # Nonzero gamma exercises the attention path. Tolerance is relaxed because
    # the softmax denominator uses the EUP approximate reciprocal.
    gamma1 = jnp.array([0.5], dtype=jnp.float32)
    out1 = jax.block_until_ready(cam_module(x, gamma1))
    ref1 = cam_reference(x, gamma1)
    assert jnp.allclose(out1, ref1, atol=1e-2, rtol=1e-2)

    # Exercise the K-tiled energy path (N=256 split into 128-wide tiles).
    out2 = jax.block_until_ready(cam_module(x, gamma1, tk_target=128))
    assert jnp.allclose(out2, ref1, atol=1e-2, rtol=1e-2)

    print("KERNEL_OK")
</pallas_src>

<mosaic_0001>
module attributes {stable_mosaic.version = 11 : i64} {
  func.func @_cam_kernel(%arg0: i32, %arg1: memref<1xf32, #tpu.memory_space<smem>>, %arg2: memref<2x4x256xf32, #tpu.memory_space<vmem>>, %arg3: memref<2x4x256xf32, #tpu.memory_space<vmem>>) attributes {dimension_semantics = [#tpu.dimension_semantics<parallel>], iteration_bounds = array<i64: 1>, scalar_prefetch = 0 : i64, scratch_operands = 0 : i64, tpu.core_type = #tpu.core_type<tc>, window_params = [{transform_indices = @transform_0, window_bounds = array<i64: 1>}, {transform_indices = @transform_1, window_bounds = array<i64: 2, 4, 256>}, {transform_indices = @transform_2, window_bounds = array<i64: 2, 4, 256>}]} {
    %c0 = arith.constant 0 : index
    %c0_0 = arith.constant 0 : index
    %c0_1 = arith.constant 0 : index
    %0 = vector.load %arg2[%c0, %c0_0, %c0_1] : memref<2x4x256xf32, #tpu.memory_space<vmem>>, vector<2x4x256xf32>
    %cst = arith.constant dense<0.000000e+00> : vector<2x4x4xf32>
    %1 = tpu.matmul %0, %0, %cst {dimension_numbers = #tpu.dot_dimension_numbers<[2], [2], [1], [1], [0, 0, 0, 1, 1, 1], [0], [0]>} : vector<2x4x256xf32>, vector<2x4x256xf32>, vector<2x4x4xf32> -> vector<2x4x4xf32>
    %cst_2 = arith.constant dense<0x7F800000> : vector<2x4xf32>
    %2 = vector.multi_reduction <minimumf>, %1, %cst_2 [2] : vector<2x4x4xf32> to vector<2x4xf32>
    %3 = vector.shape_cast %2 : vector<2x4xf32> to vector<2x4x1xf32>
    %4 = vector.broadcast %3 : vector<2x4x1xf32> to vector<2x4x4xf32>
    %5 = arith.subf %4, %1 : vector<2x4x4xf32>
    %6 = math.exp %5 : vector<2x4x4xf32>
    %cst_3 = arith.constant dense<0.000000e+00> : vector<2x4xf32>
    %7 = vector.multi_reduction <add>, %6, %cst_3 [2] : vector<2x4x4xf32> to vector<2x4xf32>
    %8 = vector.shape_cast %7 : vector<2x4xf32> to vector<2x4x1xf32>
    %9 = tpu.reciprocal %8 {approx = true} : vector<2x4x1xf32> -> vector<2x4x1xf32>
    %10 = vector.broadcast %9 : vector<2x4x1xf32> to vector<2x4x4xf32>
    %11 = arith.mulf %6, %10 : vector<2x4x4xf32>
    %cst_4 = arith.constant dense<0.000000e+00> : vector<2x4x256xf32>
    %12 = tpu.matmul %11, %0, %cst_4 {dimension_numbers = #tpu.dot_dimension_numbers<[2], [1], [1], [2], [0, 0, 0, 1, 1, 2], [0], [0]>} : vector<2x4x4xf32>, vector<2x4x256xf32>, vector<2x4x256xf32> -> vector<2x4x256xf32>
    %c0_5 = arith.constant 0 : index
    %13 = memref.load %arg1[%c0_5] : memref<1xf32, #tpu.memory_space<smem>>
    %14 = vector.broadcast %13 : f32 to vector<2x4x256xf32>
    %15 = arith.mulf %14, %12 : vector<2x4x256xf32>
    %16 = arith.addf %15, %0 : vector<2x4x256xf32>
    %c0_6 = arith.constant 0 : index
    %c0_7 = arith.constant 0 : index
    %c0_8 = arith.constant 0 : index
    %17 = vector.load %arg3[%c0_6, %c0_7, %c0_8] : memref<2x4x256xf32, #tpu.memory_space<vmem>>, vector<2x4x256xf32>
    tpu.vector_store %arg3[%c0_6, %c0_7, %c0_8], %16 {strides = array<i32>} : memref<2x4x256xf32, #tpu.memory_space<vmem>>, vector<2x4x256xf32>,
    return
  }
  func.func @transform_0(%arg0: i32) -> i32 {
    %c0_i32 = arith.constant 0 : i32
    %c0_i32_0 = arith.constant 0 : i32
    return %c0_i32 : i32
  }
  func.func @transform_1(%arg0: i32) -> (i32, i32, i32) {
    %c0_i32 = arith.constant 0 : i32
    %c0_i32_0 = arith.constant 0 : i32
    %c0_i32_1 = arith.constant 0 : i32
    return %arg0, %c0_i32, %c0_i32_0 : i32, i32, i32
  }
  func.func @transform_2(%arg0: i32) -> (i32, i32, i32) {
    %c0_i32 = arith.constant 0 : i32
    %c0_i32_0 = arith.constant 0 : i32
    %c0_i32_1 = arith.constant 0 : i32
    return %arg0, %c0_i32, %c0_i32_0 : i32, i32, i32
  }
}

</mosaic_0001>

<bundles_post_ra>
// kernel: tpu_custom_call.1
= control target key start
LH: loop header
LB: loop body
LE: loop exit
PB: predicated region body
PF: predicated region fallthrough
CT: control target
= control target key end

     0   :  { %8 = vsyncpa [#allocation4], 0  ;;  %s533_s0 = inlined_call_operand.<no memory space> [shape: f32[1], index: 0, kind: input, shape index: {}]   ;;  %s534_s1 = inlined_call_operand.hbm [shape: f32[2,4,256], index: 1, kind: input, shape index: {}]   ;;  %s535_s2 = inlined_call_operand.hbm [shape: f32[2,4,256], index: 2, kind: output, shape index: {}]  }
   0x1   :  { %9 = vsyncpa [#allocation5], 0  ;;  %s462_s9 = smov [#allocation3]   ;;  %s414_s13 = scalar_lea.hbm %s534_s1, 256 }
   0x2   :  { %s17_s10 = sshll.u32 %s462_s9, 4  ;;  %p415_p0 = scmp.ne.s32.totalorder %s534_s1, %s414_s13  ;;  %s18_s10 = int_to_ptr.vmem [resolvable:$true] %s17_s10 }
   0x3   :  { %p418_p1 = scmp.lt.u32.totalorder %s414_s13, %s534_s1 }
   0x5   :  { %p420_p2 = pnand %p418_p1, %p415_p0 }
   0x7   :  { %423 = shalt.err (!%p420_p2)
}
   0x8   :  { %s424_s18 = scalar_lea.vmem %s18_s10, 256  ;;  %p429_p4 = scmp.lt.s32.totalorder %s18_s10, %s18_s10 }
   0x9   :  { %p425_p3 = scmp.ne.s32.totalorder %s18_s10, %s424_s18  ;;  %p430_p5 = scmp.lt.s32.totalorder %s424_s18, %s424_s18 }
   0xb   :  { %p431_p6 = por %p430_p5, %p429_p4 }
   0xd   :  { %p432_p7 = pnand %p431_p6, %p425_p3 }
   0xf   :  { %435 = shalt.err (!%p432_p7)
}
  0x10   :  { %s463_s19 = smov 128   ;;  %s464_s20 = smov 8  }
  0x11   :  { %23 = dma.hbm_to_vmem [thread:$0]  %s534_s1, 256, %s18_s10, [#allocation4], %s463_s19, %s463_s19, %s464_s20  }
  0x12   :  { %458 = dma.done.wait [#allocation4], 256  }
  0x13   :  { %459 = vsyncadd [#allocation4], 4294967040  ;;  %v27_v0 = vld [vmem:[#allocation3] sm:$0xff]  ;;  %v497_v1 = vld [vmem:[#allocation3 + $0x8] sm:$0xff]  ;;  %vm175_vm0 = vcmask 27648   ;;  %vm202_vm1 = vcmask 1043456   ;;  %v357_v27 = vstv %s533_s0 }
  0x14   :  { %v30_v2 = vcombine.high %v27_v0, %v27_v0  ;;  %v501_v3 = vcombine.high %v497_v1, %v497_v1  ;;  %v465_v20 = vmov 0.0   ;;  %vm198_vm2 = vcmask 31744   ;;  %s466_s24 = smov [#allocation6]  }
  0x15   :  { %s381_s25 = sshll.u32 %s466_s24, 4  ;;  %s382_s25 = int_to_ptr.vmem [resolvable:$true] %s381_s25 }
  0x16   :  { %32 = vmatprep.subr.mxu0 %v30_v2  ;;  %96 = vmatprep.mubr.f32.mxu0 %v30_v2  ;;  %s436_s0 = scalar_lea.vmem %s382_s25, 256  ;;  %p441_p9 = scmp.lt.s32.totalorder %s382_s25, %s382_s25 }
  0x17   :  { %33 = vmatpush1.xpose.msra.mxu0 %v27_v0  ;;  %105 = vmatprep.subr.mxu1 %v501_v3  ;;  %p437_p8 = scmp.ne.s32.totalorder %s382_s25, %s436_s0  ;;  %p442_p10 = scmp.lt.s32.totalorder %s436_s0, %s436_s0 }
  0x18   :  { %106 = vmatpush1.xpose.msra.mxu1 %v497_v1  ;;  %169 = vmatprep.mubr.f32.mxu1 %v501_v3 }
  0x19   :  { %393 = vmatprep.subr.msk.mxu0 %vm202_vm1, %v30_v2  ;;  %396 = vmatprep.subr.msk.mxu1 %vm202_vm1, %v501_v3  ;;  %p443_p11 = por %p442_p10, %p441_p9 }
  0x1a   :  { %97 = vmatmul.mubr.f32.vlgmr.msra.gmra.mrb[0].mxu0 %v27_v0 }
  0x1b   :  { %170 = vmatmul.mubr.f32.vlgmr.msra.gmra.mrb[0].mxu1 %v497_v1  ;;  %394 = vmatpush1.msk.msra.mxu0 %vm202_vm1, %v27_v0  ;;  %p444_p12 = pnand %p443_p11, %p437_p8 }
  0x1c   :  { %271 = vmatprep.mubr.f32.mxu0 %v465_v20  ;;  %397 = vmatpush1.msk.msra.mxu1 %vm202_vm1, %v497_v1 }
  0x1d   :  { %349 = vmatprep.mubr.f32.mxu1 %v465_v20 }
  0xed   :  { %v98_v4 = vpop.f32.mrb[0].mxu0 }
  0xee   :  { %v100_v5 = vpop.f32.mrb[1].mxu0  ;;  %v176_v6 = vsel %vm175_vm0, %v98_v4, inf  ;;  %v171_v7 = vpop.f32.mrb[0].mxu1 }
  0xef   :  { %177 = vmin.xlane.f32.xlu0 %v176_v6  ;;  %v173_v8 = vpop.f32.mrb[1].mxu1  ;;  %v179_v9 = vsel %vm175_vm0, %v171_v7, inf }
  0xf3   :  { %180 = vmin.xlane.f32.xlu0 %v179_v9 }
 0x17c   :  { %v178_v10 = vpop.xlane.xlu0 %177 }
 0x17d   :  { %v182_v11 = vsub.f32 %v178_v10, %v98_v4 }
 0x17f   :  { %v184_v12 = vmul.f32 1.442695, %v182_v11 }
 0x180   :  { %v181_v13 = vpop.xlane.xlu0 %180 }
 0x181   :  { %406 = vpow2.f32 %v184_v12  ;;  %v183_v14 = vsub.f32 %v181_v13, %v171_v7 }
 0x183   :  { %v186_v15 = vmul.f32 1.442695, %v183_v14 }
 0x185   :  { %408 = vpow2.f32 %v186_v15 }
 0x18b   :  { %v407_v16 = vpop.eup %406 }
 0x18c   :  { %v188_v17 = vsel %vm175_vm0, %v407_v16, 0.0 }
 0x18d   :  { %189 = vadd.xlane.f32.xlu1 %v188_v17 }
 0x18f   :  { %v409_v18 = vpop.eup %408 }
 0x190   :  { %v191_v19 = vsel %vm175_vm0, %v409_v18, 0.0 }
 0x191   :  { %192 = vadd.xlane.f32.xlu1 %v191_v19 }
 0x21a   :  { %v190_v21 = vpop.xlane.xlu1 %189 }
 0x21b   :  { %410 = vrcp.f32 %v190_v21 }
 0x21e   :  { %v193_v22 = vpop.xlane.xlu1 %192 }
 0x21f   :  { %412 = vrcp.f32 %v193_v22 }
 0x225   :  { %v411_v23 = vpop.eup %410 }
 0x226   :  { %v196_v24 = vmul.f32 %v411_v23, %v407_v16 }
 0x228   :  { %395 = vmatmul.mubr.msk.f32.vlgmr.msra.gmra.mrb[2].mxu0 %vm198_vm2, %v196_v24 }
 0x229   :  { %v413_v25 = vpop.eup %412 }
 0x22a   :  { %v197_v26 = vmul.f32 %v413_v25, %v409_v18 }
 0x22c   :  { %398 = vmatmul.mubr.msk.f32.vlgmr.msra.gmra.mrb[2].mxu1 %vm198_vm2, %v197_v26 }
 0x2fb   :  { %v273_v28 = vpop.f32.mrb[2].mxu0 }
 0x2fc   :  { %v358_v29 = vmul.f32 %v357_v27, %v273_v28  ;;  %v275_v30 = vpop.f32.mrb[3].mxu0 }
 0x2fd   :  { %v359_v31 = vmul.f32 %v357_v27, %v275_v30 }
 0x2fe   :  { %v362_v32 = vadd.f32 %v358_v29, %v27_v0 }
 0x2ff   :  { %v363_v33 = vadd.f32 %v359_v31, %v30_v2  ;;  %v351_v34 = vpop.f32.mrb[2].mxu1 }
 0x300   :  { %v360_v35 = vmul.f32 %v357_v27, %v351_v34  ;;  %v353_v36 = vpop.f32.mrb[3].mxu1 }
 0x301   :  { %v370_v37 = vcombine.low %v362_v32, %v363_v33  ;;  %v361_v38 = vmul.f32 %v357_v27, %v353_v36 }
 0x302   :  { %v364_v39 = vadd.f32 %v360_v35, %v497_v1 }
 0x303   :  { %374 = vst [vmem:[#allocation6] sm:$0xff] %v370_v37  ;;  %v365_v40 = vadd.f32 %v361_v38, %v501_v3 }
 0x305   :  { %v371_v41 = vcombine.low %v364_v39, %v365_v40 }
 0x307   :  { %375 = vst [vmem:[#allocation6 + $0x8] sm:$0xff] %v371_v41 }
 0x308   :  { %447 = shalt.err (!%p444_p12)
}
 0x309   :  { %s448_s28 = scalar_lea.hbm %s535_s2, 256 }
 0x30a   :  { %p449_p13 = scmp.ne.s32.totalorder %s535_s2, %s448_s28  ;;  %p452_p0 = scmp.lt.u32.totalorder %s448_s28, %s535_s2 }
 0x30c   :  { %p454_p1 = pnand %p452_p0, %p449_p13 }
 0x30e   :  { %457 = shalt.err (!%p454_p1)
}
 0x30f   :  { %387 = dma.vmem_to_hbm [thread:$0]  %s382_s25, 256, %s535_s2, [#allocation5], %s463_s19, %s463_s19, %s464_s20  }
 0x310   :  { %460 = dma.done.wait [#allocation5], 256  }
 0x311   :  { %461 = vsyncadd [#allocation5], 4294967040 }
 0x312   :  { %391 = vsyncpa [#allocation4], 1 }
 0x313   :  { %392 = vsyncpa [#allocation5], 1 }

</bundles_post_ra>
